<compile_context>
chip_gen: v6e
topology: v6e:2x2x1
jax: 0.10.0
libtpu: 0.0.40
codegen_flags: <defaults>
</compile_context>

<pallas_src>
import functools

import jax
import jax.numpy as jnp
from jax.experimental import pallas as pl
from jax.experimental.pallas import tpu as pltpu

_GROUP = 32  # rows per inner accumulation group (multiple of 8)


# ----------------------------------------------------------------------------
# Fused kernel: one N-chunk -> (1, 8, 128) partial-sum slab.
# ----------------------------------------------------------------------------
def _fused_loss_kernel(cls_ref, loc_ref, gt_ref, out_ref, *, iou_thres, tr, group):
    """cls_ref: (3, tr, 128)  [0]=gt_iou, [1]=class-0 logit, [2]=class-1 logit
       loc_ref: (4*tr, 128)   flat pred_loc stream
       gt_ref : (4*tr, 128)   flat gt_offset stream
       out_ref: (1, 8, 128)   per-chunk partial sums (lane-dense)."""
    n_groups = tr // group
    lg = 4 * group  # loc rows per group

    def body(g, acc):
        r = pl.multiple_of(g * group, group)
        iou = cls_ref[0, pl.ds(r, group), :]
        l0 = cls_ref[1, pl.ds(r, group), :]
        l1 = cls_ref[2, pl.ds(r, group), :]

        # 2-class cross-entropy, stable softplus form (one exp + one log):
        #   ce = max(l0,l1) - logit[label] + log(1 + exp(-|l0 - l1|))
        picked = jnp.where(iou > iou_thres, l1, l0)
        ce = jnp.maximum(l0, l1) - picked + jnp.log(1.0 + jnp.exp(-jnp.abs(l0 - l1)))

        rl = pl.multiple_of(g * lg, lg)
        d = loc_ref[pl.ds(rl, lg), :] - gt_ref[pl.ds(rl, lg), :]
        sq = d * d

        # Fold this group into the (8,128) accumulator (pure VPU adds,
        # no cross-lane reduce in the hot path).
        part = acc
        for k in range(group // 8):
            part = part + ce[k * 8:(k + 1) * 8, :]
        for k in range(lg // 8):
            part = part + sq[k * 8:(k + 1) * 8, :]
        return part

    acc = jax.lax.fori_loop(0, n_groups, body,
                            jnp.zeros((8, 128), jnp.float32), unroll=True)
    out_ref[...] = acc[None]


# ----------------------------------------------------------------------------
# Detector.loss_fn equivalent: all anchor levels fused into one pallas_call.
# Per-level inputs use the PyTorch NCHW layouts:
#   gt_iou (B,H,W), pred_log (B,2,H,W), pred_loc/gt_offset (B,4,H,W).
# ----------------------------------------------------------------------------
def detector_loss(gt_iou_list, gt_offset_list, pred_log_list, pred_loc_list, cfg,
                  rows_per_chunk=512):
    iou_thres = float(cfg['train']['iou_thres'])
    batch_size = float(cfg['train']['batch_size'])
    f32 = jnp.float32
    group = _GROUP

    n_valid = int(sum(int(x.size) for x in gt_iou_list))     # total anchors
    total_rows = -(-n_valid // 128)

    # Chunking: cap tr at rows_per_chunk, but keep >= 2 chunks when there is
    # enough work so both v7x TensorCores (and their HBM paths) are used.
    half_rows = -(-total_rows // 2)
    tr = min(int(rows_per_chunk),
             max(group, ((half_rows + group - 1) // group) * group))
    tr = ((tr + group - 1) // group) * group
    num_chunks = max(1, -(-total_rows // tr))
    padded_rows = num_chunks * tr
    n_pad = padded_rows * 128

    pad_n = n_pad - n_valid
    pad_n4 = 4 * n_pad - 4 * n_valid

    # Class slab: iou / logit0 / logit1 streams, tail padding folded into the
    # same concat (single HBM copy), then a free reshape to (3, rows, 128).
    # Padding values make the padded CE exactly 0:
    #   iou=0 (not > iou_thres), l0=0, l1=-1e9  ->  ce = 0 - 0 + log(1+e^{-1e9}) = 0.
    iou_parts = [x.reshape(-1).astype(f32) for x in gt_iou_list]
    l0_parts = [p[:, 0].reshape(-1).astype(f32) for p in pred_log_list]
    l1_parts = [p[:, 1].reshape(-1).astype(f32) for p in pred_log_list]
    cls_slab = jnp.concatenate(
        iou_parts + [jnp.zeros((pad_n,), f32)]
        + l0_parts + [jnp.zeros((pad_n,), f32)]
        + l1_parts + [jnp.full((pad_n,), -1e9, f32)]
    ).reshape(3, padded_rows, 128)

    # Loc / gt slabs: MSE needs no channel grouping, so just a contiguous
    # flatten per level (free view) + one concat carrying the zero padding
    # (zero pad contributes 0 to diff^2 -> no mask needed).
    loc_slab = jnp.concatenate(
        [p.reshape(-1).astype(f32) for p in pred_loc_list]
        + [jnp.zeros((pad_n4,), f32)]).reshape(4 * padded_rows, 128)
    gt_slab = jnp.concatenate(
        [g.reshape(-1).astype(f32) for g in gt_offset_list]
        + [jnp.zeros((pad_n4,), f32)]).reshape(4 * padded_rows, 128)

    kern = functools.partial(_fused_loss_kernel,
                             iou_thres=iou_thres, tr=tr, group=group)

    partials = pl.pallas_call(
        kern,
        out_shape=jax.ShapeDtypeStruct((num_chunks, 8, 128), jnp.float32),
        grid=(num_chunks,),
        in_specs=[
            pl.BlockSpec((3, tr, 128), lambda i: (0, i, 0)),
            pl.BlockSpec((4 * tr, 128), lambda i: (i, 0)),
            pl.BlockSpec((4 * tr, 128), lambda i: (i, 0)),
        ],
        out_specs=pl.BlockSpec((1, 8, 128), lambda i: (i, 0, 0)),
        compiler_params=pltpu.CompilerParams(
            dimension_semantics=("parallel",)),
    )(cls_slab, loc_slab, gt_slab)

    # Final scalar reduce + /batch_size hoisted out of the kernel.
    return jnp.sum(partials) / batch_size


# ----------------------------------------------------------------------------
# Pure-JAX reference (mirrors the PyTorch loss_fn) for a correctness check.
# ----------------------------------------------------------------------------
def detector_loss_ref(gt_iou_list, gt_offset_list, pred_log_list, pred_loc_list, cfg):
    iou_thres = cfg['train']['iou_thres']
    batch_size = cfg['train']['batch_size']
    total = jnp.float32(0.0)
    for i in range(len(cfg['network']['anchor_sizes'])):
        iou = gt_iou_list[i]                               # (B,H,W)
        logits = pred_log_list[i]                          # (B,2,H,W)
        label = (iou > iou_thres).astype(jnp.int32)        # (B,H,W)
        logp = jax.nn.log_softmax(logits, axis=1)          # (B,2,H,W)
        ce = -jnp.take_along_axis(logp, label[:, None], axis=1)[:, 0]
        log_loss = jnp.sum(ce) / batch_size
        diff = pred_loc_list[i] - gt_offset_list[i]
        loc_loss = jnp.sum(diff * diff) / batch_size
        total = total + log_loss + loc_loss
    return total


if __name__ == "__main__":
    cfg = {
        'network': {'anchor_sizes': [32, 64]},
        'train': {'image_shape': 64, 'batch_size': 2, 'iou_thres': 0.5},
    }
    anchor_strides = [8, 16]     # AlphaNet strides: one feature level per anchor size
    B = cfg['train']['batch_size']
    img = cfg['train']['image_shape']

    key = jax.random.PRNGKey(0)
    gt_iou_list, gt_offset_list, pred_log_list, pred_loc_list = [], [], [], []
    for s in anchor_strides:
        h = w = img // s
        key, k1, k2, k3, k4 = jax.random.split(key, 5)
        # Synthetic stand-ins for MultiAnchor.encode / AlphaNet outputs (NCHW).
        gt_iou_list.append(jax.random.uniform(k1, (B, h, w), jnp.float32))
        gt_offset_list.append(jax.random.normal(k2, (B, 4, h, w), jnp.float32))
        pred_log_list.append(jax.random.normal(k3, (B, 2, h, w), jnp.float32))
        pred_loc_list.append(jax.random.normal(k4, (B, 4, h, w), jnp.float32))

    loss = detector_loss(gt_iou_list, gt_offset_list, pred_log_list, pred_loc_list, cfg)
    loss = jax.block_until_ready(loss)

    loss_ref = detector_loss_ref(gt_iou_list, gt_offset_list,
                                 pred_log_list, pred_loc_list, cfg)
    assert jnp.allclose(loss, loss_ref, rtol=1e-5, atol=1e-4), (loss, loss_ref)

    print("KERNEL_OK")
</pallas_src>

<mosaic_0001>
module attributes {stable_mosaic.version = 11 : i64} {
  func.func @_fused_loss_kernel(%arg0: i32, %arg1: memref<3x32x128xf32, #tpu.memory_space<vmem>>, %arg2: memref<128x128xf32, #tpu.memory_space<vmem>>, %arg3: memref<128x128xf32, #tpu.memory_space<vmem>>, %arg4: memref<1x8x128xf32, #tpu.memory_space<vmem>>) attributes {dimension_semantics = [#tpu.dimension_semantics<parallel>], iteration_bounds = array<i64: 1>, scalar_prefetch = 0 : i64, scratch_operands = 0 : i64, tpu.core_type = #tpu.core_type<tc>, window_params = [{transform_indices = @transform_0, window_bounds = array<i64: 3, 32, 128>}, {transform_indices = @transform_1, window_bounds = array<i64: 128, 128>}, {transform_indices = @transform_2, window_bounds = array<i64: 128, 128>}, {transform_indices = @transform_3, window_bounds = array<i64: 1, 8, 128>}]} {
    %cst = arith.constant 0.000000e+00 : f32
    %0 = vector.broadcast %cst : f32 to vector<8x128xf32>
    %c0_i32 = arith.constant 0 : i32
    %c32_i32 = arith.constant 32 : i32
    %1 = arith.muli %c0_i32, %c32_i32 : i32
    %2 = tpu.assume_multiple %1, 32 : i32
    %c0 = arith.constant 0 : index
    %3 = arith.index_cast %2 : i32 to index
    %c0_0 = arith.constant 0 : index
    %4 = vector.load %arg1[%c0, %3, %c0_0] : memref<3x32x128xf32, #tpu.memory_space<vmem>>, vector<1x32x128xf32>
    %5 = vector.shape_cast %4 : vector<1x32x128xf32> to vector<32x128xf32>
    %c1 = arith.constant 1 : index
    %6 = arith.index_cast %2 : i32 to index
    %c0_1 = arith.constant 0 : index
    %7 = vector.load %arg1[%c1, %6, %c0_1] : memref<3x32x128xf32, #tpu.memory_space<vmem>>, vector<1x32x128xf32>
    %8 = vector.shape_cast %7 : vector<1x32x128xf32> to vector<32x128xf32>
    %c2 = arith.constant 2 : index
    %9 = arith.index_cast %2 : i32 to index
    %c0_2 = arith.constant 0 : index
    %10 = vector.load %arg1[%c2, %9, %c0_2] : memref<3x32x128xf32, #tpu.memory_space<vmem>>, vector<1x32x128xf32>
    %11 = vector.shape_cast %10 : vector<1x32x128xf32> to vector<32x128xf32>
    %cst_3 = arith.constant 5.000000e-01 : f32
    %12 = vector.broadcast %cst_3 : f32 to vector<32x128xf32>
    %13 = arith.cmpf ogt, %5, %12 : vector<32x128xf32>
    %14 = arith.select %13, %11, %8 : vector<32x128xi1>, vector<32x128xf32>
    %15 = arith.maximumf %8, %11 : vector<32x128xf32>
    %16 = arith.subf %15, %14 : vector<32x128xf32>
    %17 = arith.subf %8, %11 : vector<32x128xf32>
    %18 = math.absf %17 : vector<32x128xf32>
    %cst_4 = arith.constant 0.000000e+00 : f32
    %19 = vector.broadcast %cst_4 : f32 to vector<32x128xf32>
    %20 = arith.subf %19, %18 : vector<32x128xf32>
    %21 = math.exp %20 : vector<32x128xf32>
    %cst_5 = arith.constant 1.000000e+00 : f32
    %22 = vector.broadcast %cst_5 : f32 to vector<32x128xf32>
    %23 = arith.addf %22, %21 : vector<32x128xf32>
    %24 = math.log %23 : vector<32x128xf32>
    %25 = arith.addf %16, %24 : vector<32x128xf32>
    %c128_i32 = arith.constant 128 : i32
    %26 = arith.muli %c0_i32, %c128_i32 : i32
    %27 = tpu.assume_multiple %26, 128 : i32
    %28 = arith.index_cast %27 : i32 to index
    %c0_6 = arith.constant 0 : index
    %29 = vector.load %arg2[%28, %c0_6] : memref<128x128xf32, #tpu.memory_space<vmem>>, vector<128x128xf32>
    %30 = arith.index_cast %27 : i32 to index
    %c0_7 = arith.constant 0 : index
    %31 = vector.load %arg3[%30, %c0_7] : memref<128x128xf32, #tpu.memory_space<vmem>>, vector<128x128xf32>
    %32 = arith.subf %29, %31 : vector<128x128xf32>
    %33 = arith.mulf %32, %32 : vector<128x128xf32>
    %34 = vector.extract_strided_slice %25 {offsets = [0, 0], sizes = [8, 128], strides = [1, 1]} : vector<32x128xf32> to vector<8x128xf32>
    %35 = arith.addf %0, %34 : vector<8x128xf32>
    %36 = vector.extract_strided_slice %25 {offsets = [8, 0], sizes = [8, 128], strides = [1, 1]} : vector<32x128xf32> to vector<8x128xf32>
    %37 = arith.addf %35, %36 : vector<8x128xf32>
    %38 = vector.extract_strided_slice %25 {offsets = [16, 0], sizes = [8, 128], strides = [1, 1]} : vector<32x128xf32> to vector<8x128xf32>
    %39 = arith.addf %37, %38 : vector<8x128xf32>
    %40 = vector.extract_strided_slice %25 {offsets = [24, 0], sizes = [8, 128], strides = [1, 1]} : vector<32x128xf32> to vector<8x128xf32>
    %41 = arith.addf %39, %40 : vector<8x128xf32>
    %42 = vector.extract_strided_slice %33 {offsets = [0, 0], sizes = [8, 128], strides = [1, 1]} : vector<128x128xf32> to vector<8x128xf32>
    %43 = arith.addf %41, %42 : vector<8x128xf32>
    %44 = vector.extract_strided_slice %33 {offsets = [8, 0], sizes = [8, 128], strides = [1, 1]} : vector<128x128xf32> to vector<8x128xf32>
    %45 = arith.addf %43, %44 : vector<8x128xf32>
    %46 = vector.extract_strided_slice %33 {offsets = [16, 0], sizes = [8, 128], strides = [1, 1]} : vector<128x128xf32> to vector<8x128xf32>
    %47 = arith.addf %45, %46 : vector<8x128xf32>
    %48 = vector.extract_strided_slice %33 {offsets = [24, 0], sizes = [8, 128], strides = [1, 1]} : vector<128x128xf32> to vector<8x128xf32>
    %49 = arith.addf %47, %48 : vector<8x128xf32>
    %50 = vector.extract_strided_slice %33 {offsets = [32, 0], sizes = [8, 128], strides = [1, 1]} : vector<128x128xf32> to vector<8x128xf32>
    %51 = arith.addf %49, %50 : vector<8x128xf32>
    %52 = vector.extract_strided_slice %33 {offsets = [40, 0], sizes = [8, 128], strides = [1, 1]} : vector<128x128xf32> to vector<8x128xf32>
    %53 = arith.addf %51, %52 : vector<8x128xf32>
    %54 = vector.extract_strided_slice %33 {offsets = [48, 0], sizes = [8, 128], strides = [1, 1]} : vector<128x128xf32> to vector<8x128xf32>
    %55 = arith.addf %53, %54 : vector<8x128xf32>
    %56 = vector.extract_strided_slice %33 {offsets = [56, 0], sizes = [8, 128], strides = [1, 1]} : vector<128x128xf32> to vector<8x128xf32>
    %57 = arith.addf %55, %56 : vector<8x128xf32>
    %58 = vector.extract_strided_slice %33 {offsets = [64, 0], sizes = [8, 128], strides = [1, 1]} : vector<128x128xf32> to vector<8x128xf32>
    %59 = arith.addf %57, %58 : vector<8x128xf32>
    %60 = vector.extract_strided_slice %33 {offsets = [72, 0], sizes = [8, 128], strides = [1, 1]} : vector<128x128xf32> to vector<8x128xf32>
    %61 = arith.addf %59, %60 : vector<8x128xf32>
    %62 = vector.extract_strided_slice %33 {offsets = [80, 0], sizes = [8, 128], strides = [1, 1]} : vector<128x128xf32> to vector<8x128xf32>
    %63 = arith.addf %61, %62 : vector<8x128xf32>
    %64 = vector.extract_strided_slice %33 {offsets = [88, 0], sizes = [8, 128], strides = [1, 1]} : vector<128x128xf32> to vector<8x128xf32>
    %65 = arith.addf %63, %64 : vector<8x128xf32>
    %66 = vector.extract_strided_slice %33 {offsets = [96, 0], sizes = [8, 128], strides = [1, 1]} : vector<128x128xf32> to vector<8x128xf32>
    %67 = arith.addf %65, %66 : vector<8x128xf32>
    %68 = vector.extract_strided_slice %33 {offsets = [104, 0], sizes = [8, 128], strides = [1, 1]} : vector<128x128xf32> to vector<8x128xf32>
    %69 = arith.addf %67, %68 : vector<8x128xf32>
    %70 = vector.extract_strided_slice %33 {offsets = [112, 0], sizes = [8, 128], strides = [1, 1]} : vector<128x128xf32> to vector<8x128xf32>
    %71 = arith.addf %69, %70 : vector<8x128xf32>
    %72 = vector.extract_strided_slice %33 {offsets = [120, 0], sizes = [8, 128], strides = [1, 1]} : vector<128x128xf32> to vector<8x128xf32>
    %73 = arith.addf %71, %72 : vector<8x128xf32>
    %c1_i32 = arith.constant 1 : i32
    %74 = vector.shape_cast %73 : vector<8x128xf32> to vector<1x8x128xf32>
    %c0_8 = arith.constant 0 : index
    %c0_9 = arith.constant 0 : index
    %c0_10 = arith.constant 0 : index
    %75 = vector.load %arg4[%c0_8, %c0_9, %c0_10] : memref<1x8x128xf32, #tpu.memory_space<vmem>>, vector<1x8x128xf32>
    tpu.vector_store %arg4[%c0_8, %c0_9, %c0_10], %74 {strides = array<i32>} : memref<1x8x128xf32, #tpu.memory_space<vmem>>, vector<1x8x128xf32>,
    return
  }
  func.func @transform_0(%arg0: i32) -> (i32, i32, i32) {
    %c0_i32 = arith.constant 0 : i32
    %c0_i32_0 = arith.constant 0 : i32
    %c0_i32_1 = arith.constant 0 : i32
    return %c0_i32, %arg0, %c0_i32_0 : i32, i32, i32
  }
  func.func @transform_1(%arg0: i32) -> (i32, i32) {
    %c0_i32 = arith.constant 0 : i32
    %c0_i32_0 = arith.constant 0 : i32
    return %arg0, %c0_i32 : i32, i32
  }
  func.func @transform_2(%arg0: i32) -> (i32, i32) {
    %c0_i32 = arith.constant 0 : i32
    %c0_i32_0 = arith.constant 0 : i32
    return %arg0, %c0_i32 : i32, i32
  }
  func.func @transform_3(%arg0: i32) -> (i32, i32, i32) {
    %c0_i32 = arith.constant 0 : i32
    %c0_i32_0 = arith.constant 0 : i32
    %c0_i32_1 = arith.constant 0 : i32
    return %arg0, %c0_i32, %c0_i32_0 : i32, i32, i32
  }
}

</mosaic_0001>

<bundles_post_ra>
// kernel: tpu_custom_call.1
= control target key start
LH: loop header
LB: loop body
LE: loop exit
PB: predicated region body
PF: predicated region fallthrough
CT: control target
= control target key end

     0   :  { %8 = vsyncpa [#allocation3], 0  ;;  %s378_s0 = inlined_call_operand.hbm [shape: f32[3,32,128], index: 0, kind: input, shape index: {}]   ;;  %s379_s1 = inlined_call_operand.hbm [shape: f32[128,128], index: 1, kind: input, shape index: {}]   ;;  %s380_s2 = inlined_call_operand.hbm [shape: f32[128,128], index: 2, kind: input, shape index: {}]   ;;  %s381_s3 = inlined_call_operand.hbm [shape: f32[1,8,128], index: 3, kind: output, shape index: {}]  }
   0x1   :  { %9 = vsyncpa [#allocation6], 0 }
   0x2   :  { %10 = vsyncpa [#allocation4], 0  ;;  %s335_s12 = smov [#allocation5]   ;;  %s336_s14 = smov [#allocation2]  }
   0x3   :  { %s28_s13 = sshll.u32 %s335_s12, 4  ;;  %s16_s15 = sshll.u32 %s336_s14, 4  ;;  %s29_s13 = int_to_ptr.vmem [resolvable:$true] %s28_s13  ;;  %s17_s15 = int_to_ptr.vmem [resolvable:$true] %s16_s15 }
   0x4   :  { %s257_s16 = scalar_lea.vmem %s29_s13, 2048  ;;  %p262_p1 = scmp.lt.s32.totalorder %s29_s13, %s29_s13 }
   0x5   :  { %p258_p0 = scmp.ne.s32.totalorder %s29_s13, %s257_s16  ;;  %p263_p2 = scmp.lt.s32.totalorder %s257_s16, %s257_s16 }
   0x7   :  { %p264_p3 = por %p263_p2, %p262_p1 }
   0x9   :  { %p265_p4 = pnand %p264_p3, %p258_p0 }
   0xb   :  { %268 = shalt.err (!%p265_p4)
}
   0xc   :  { %s337_s17 = smov 128   ;;  %s338_s18 = smov 8  }
   0xd   :  { %34 = dma.hbm_to_vmem [thread:$0]  %s379_s1, 2048, %s29_s13, [#allocation6], %s337_s17, %s337_s17, %s338_s18  }
   0xe   :  { %s277_s21 = scalar_lea.vmem %s17_s15, 1536  ;;  %p282_p6 = scmp.lt.s32.totalorder %s17_s15, %s17_s15 }
   0xf   :  { %p278_p5 = scmp.ne.s32.totalorder %s17_s15, %s277_s21  ;;  %p283_p7 = scmp.lt.s32.totalorder %s277_s21, %s277_s21 }
  0x11   :  { %p284_p8 = por %p283_p7, %p282_p6 }
  0x13   :  { %p285_p9 = pnand %p284_p8, %p278_p5 }
  0x15   :  { %288 = shalt.err (!%p285_p9)
}
  0x16   :  { %22 = dma.hbm_to_vmem [thread:$0]  %s378_s0, 1536, %s17_s15, [#allocation3], %s337_s17, %s337_s17, %s338_s18  }
  0x17   :  { %s339_s24 = smov [#allocation7]  }
  0x18   :  { %s40_s25 = sshll.u32 %s339_s24, 4  ;;  %s41_s25 = int_to_ptr.vmem [resolvable:$true] %s40_s25 }
  0x19   :  { %s297_s26 = scalar_lea.vmem %s41_s25, 2048  ;;  %p302_p11 = scmp.lt.s32.totalorder %s41_s25, %s41_s25 }
  0x1a   :  { %p298_p10 = scmp.ne.s32.totalorder %s41_s25, %s297_s26  ;;  %p303_p12 = scmp.lt.s32.totalorder %s297_s26, %s297_s26 }
  0x1c   :  { %p304_p13 = por %p303_p12, %p302_p11 }
  0x1e   :  { %p305_p0 = pnand %p304_p13, %p298_p10 }
  0x20   :  { %308 = shalt.err (!%p305_p0)
}
  0x21   :  { %46 = dma.hbm_to_vmem [thread:$0]  %s380_s2, 2048, %s41_s25, [#allocation6], %s337_s17, %s337_s17, %s338_s18  }
  0x22   :  { %329 = dma.done.wait [#allocation3], 1536  }
  0x23   :  { %330 = vsyncadd [#allocation3], 4294965760 }
  0x24   :  { %331 = dma.done.wait [#allocation6], 4096  }
  0x25   :  { %332 = vsyncadd [#allocation6], 4294963200  ;;  %v62_v0 = vld [vmem:[#allocation2 + $0x20] sm:$0xff]  ;;  %v63_v1 = vld [vmem:[#allocation2 + $0x28] sm:$0xff]  ;;  %s340_s0 = smov [#allocation8]  }
  0x26   :  { %v64_v2 = vld [vmem:[#allocation2 + $0x30] sm:$0xff]  ;;  %v370_v3 = vld [vmem:[#allocation2 + $0x38] sm:$0xff]  ;;  %v68_v4 = vld [vmem:[#allocation2 + $0x40] sm:$0xff]  ;;  %s215_s2 = sshll.u32 %s340_s0, 4  ;;  %s216_s2 = int_to_ptr.vmem [resolvable:$true] %s215_s2 }
  0x27   :  { %v69_v5 = vld [vmem:[#allocation2 + $0x48] sm:$0xff]  ;;  %v70_v6 = vld [vmem:[#allocation2 + $0x50] sm:$0xff]  ;;  %v71_v7 = vld [vmem:[#allocation2 + $0x58] sm:$0xff]  ;;  %v88_v8 = vsub.f32 %v62_v0, %v68_v4  ;;  %v80_v36 = vmax.f32 %v62_v0, %v68_v4  ;;  %s309_s28 = scalar_lea.vmem %s216_s2, 128  ;;  %p314_p2 = scmp.lt.s32.totalorder %s216_s2, %s216_s2 }
  0x28   :  { %v89_v9 = vsub.f32 %v63_v1, %v69_v5  ;;  %v90_v10 = vsub.f32 %v64_v2, %v70_v6  ;;  %v91_v11 = vsub.f32 %v370_v3, %v71_v7  ;;  %v56_v32 = vld [vmem:[#allocation2] sm:$0xff]  ;;  %v57_v33 = vld [vmem:[#allocation2 + $0x8] sm:$0xff]  ;;  %v58_v34 = vld [vmem:[#allocation2 + $0x10] sm:$0xff]  ;;  %v81_v38 = vmax.f32 %v63_v1, %v69_v5  ;;  %p310_p1 = scmp.ne.s32.totalorder %s216_s2, %s309_s28  ;;  %p315_p3 = scmp.lt.s32.totalorder %s309_s28, %s309_s28 }
  0x29   :  { %v92_v12 = vand.u32 2147483647, %v88_v8  ;;  %v59_v35 = vld [vmem:[#allocation2 + $0x18] sm:$0xff]  ;;  %vm72_vm0 = vcmp.gt.f32.partialorder %v56_v32, 0.5  ;;  %vm73_vm1 = vcmp.gt.f32.partialorder %v57_v33, 0.5  ;;  %vm74_vm2 = vcmp.gt.f32.partialorder %v58_v34, 0.5 }
  0x2a   :  { %v93_v13 = vand.u32 2147483647, %v89_v9  ;;  %v94_v14 = vand.u32 2147483647, %v90_v10  ;;  %v95_v15 = vand.u32 2147483647, %v91_v11  ;;  %v76_v37 = vsel %vm72_vm0, %v68_v4, %v62_v0  ;;  %p316_p4 = por %p315_p3, %p314_p2 }
  0x2b   :  { %v96_v16 = vsub.f32 0.0, %v92_v12  ;;  %vm75_vm3 = vcmp.gt.f32.partialorder %v59_v35, 0.5  ;;  %v77_v39 = vsel %vm73_vm1, %v69_v5, %v63_v1  ;;  %v82_v40 = vmax.f32 %v64_v2, %v70_v6  ;;  %v124_v50 = vld [vmem:[#allocation5] sm:$0xff]  ;;  %v125_v58 = vld [vmem:[#allocation5 + $0x8] sm:$0xff]  ;;  %v126_v0 = vld [vmem:[#allocation5 + $0x10] sm:$0xff] }
  0x2c   :  { %v97_v17 = vsub.f32 0.0, %v93_v13  ;;  %v98_v18 = vsub.f32 0.0, %v94_v14  ;;  %v99_v19 = vsub.f32 0.0, %v95_v15  ;;  %v78_v41 = vsel %vm74_vm2, %v70_v6, %v64_v2  ;;  %v140_v51 = vld [vmem:[#allocation7] sm:$0xff]  ;;  %v141_v59 = vld [vmem:[#allocation7 + $0x8] sm:$0xff]  ;;  %v142_v1 = vld [vmem:[#allocation7 + $0x10] sm:$0xff]  ;;  %p317_p5 = pnand %p316_p4, %p310_p1 }
  0x2d   :  { %v100_v20 = vmul.f32 1.442695, %v96_v16  ;;  %v83_v42 = vmax.f32 %v370_v3, %v71_v7  ;;  %v79_v43 = vsel %vm75_vm3, %v71_v7, %v370_v3  ;;  %v84_v44 = vsub.f32 %v80_v36, %v76_v37  ;;  %v127_v5 = vld [vmem:[#allocation5 + $0x18] sm:$0xff]  ;;  %v128_v10 = vld [vmem:[#allocation5 + $0x20] sm:$0xff]  ;;  %v129_v15 = vld [vmem:[#allocation5 + $0x28] sm:$0xff] }
  0x2e   :  { %v102_v21 = vmul.f32 1.442695, %v97_v17  ;;  %v104_v22 = vmul.f32 1.442695, %v98_v18  ;;  %v106_v23 = vmul.f32 1.442695, %v99_v19  ;;  %v85_v46 = vsub.f32 %v81_v38, %v77_v39 }
  0x2f   :  { %233 = vpow2.f32 %v100_v20  ;;  %v86_v48 = vsub.f32 %v82_v40, %v78_v41  ;;  %v87_v53 = vsub.f32 %v83_v42, %v79_v43  ;;  %v156_v62 = vsub.f32 %v124_v50, %v140_v51  ;;  %v143_v6 = vld [vmem:[#allocation7 + $0x18] sm:$0xff]  ;;  %v144_v11 = vld [vmem:[#allocation7 + $0x20] sm:$0xff]  ;;  %v145_v16 = vld [vmem:[#allocation7 + $0x28] sm:$0xff] }
  0x30   :  { %235 = vpow2.f32 %v102_v21  ;;  %v157_v3 = vsub.f32 %v125_v58, %v141_v59  ;;  %v158_v7 = vsub.f32 %v126_v0, %v142_v1  ;;  %v159_v12 = vsub.f32 %v127_v5, %v143_v6  ;;  %v130_v20 = vld [vmem:[#allocation5 + $0x30] sm:$0xff]  ;;  %v133_v35 = vld [vmem:[#allocation5 + $0x48] sm:$0xff]  ;;  %v136_v50 = vld [vmem:[#allocation5 + $0x60] sm:$0xff] }
  0x31   :  { %237 = vpow2.f32 %v104_v22  ;;  %v172_v8 = vmul.f32 %v156_v62, %v156_v62  ;;  %v160_v17 = vsub.f32 %v128_v10, %v144_v11  ;;  %v146_v21 = vld [vmem:[#allocation7 + $0x30] sm:$0xff]  ;;  %v161_v22 = vsub.f32 %v129_v15, %v145_v16  ;;  %v149_v36 = vld [vmem:[#allocation7 + $0x48] sm:$0xff]  ;;  %v152_v51 = vld [vmem:[#allocation7 + $0x60] sm:$0xff] }
  0x32   :  { %239 = vpow2.f32 %v106_v23  ;;  %v173_v13 = vmul.f32 %v157_v3, %v157_v3  ;;  %v174_v18 = vmul.f32 %v158_v7, %v158_v7  ;;  %v175_v23 = vmul.f32 %v159_v12, %v159_v12  ;;  %v134_v40 = vld [vmem:[#allocation5 + $0x50] sm:$0xff]  ;;  %v139_v1 = vld [vmem:[#allocation5 + $0x78] sm:$0xff] }
  0x33   :  { %v177_v33 = vmul.f32 %v161_v22, %v161_v22  ;;  %v150_v41 = vld [vmem:[#allocation7 + $0x50] sm:$0xff]  ;;  %v165_v42 = vsub.f32 %v133_v35, %v149_v36 }
  0x3c   :  { %v234_v24 = vpop.eup %233 }
  0x3d   :  { %v236_v25 = vpop.eup %235  ;;  %v108_v26 = vadd.f32 1.0, %v234_v24 }
  0x3e   :  { %v238_v27 = vpop.eup %237  ;;  %v109_v28 = vadd.f32 1.0, %v236_v25  ;;  %v131_v25 = vld [vmem:[#allocation5 + $0x38] sm:$0xff] }
  0x3f   :  { %v240_v29 = vpop.eup %239  ;;  %v110_v30 = vadd.f32 1.0, %v238_v27  ;;  %241 = vlog2.f32 %v108_v26  ;;  %v147_v26 = vld [vmem:[#allocation7 + $0x38] sm:$0xff]  ;;  %v162_v27 = vsub.f32 %v130_v20, %v146_v21 }
  0x40   :  { %v111_v31 = vadd.f32 1.0, %v240_v29  ;;  %243 = vlog2.f32 %v109_v28  ;;  %v176_v28 = vmul.f32 %v160_v17, %v160_v17  ;;  %v163_v32 = vsub.f32 %v131_v25, %v147_v26 }
  0x41   :  { %245 = vlog2.f32 %v110_v30  ;;  %v132_v30 = vld [vmem:[#allocation5 + $0x40] sm:$0xff]  ;;  %v178_v38 = vmul.f32 %v162_v27, %v162_v27 }
  0x42   :  { %247 = vlog2.f32 %v111_v31  ;;  %v148_v31 = vld [vmem:[#allocation7 + $0x40] sm:$0xff]  ;;  %v179_v43 = vmul.f32 %v163_v32, %v163_v32 }
  0x43   :  { %v164_v37 = vsub.f32 %v132_v30, %v148_v31 }
  0x4c   :  { %v242_v45 = vpop.eup %241 }
  0x4d   :  { %v244_v47 = vpop.eup %243  ;;  %v113_v49 = vmul.f32 0.6931472, %v242_v45  ;;  %v135_v45 = vld [vmem:[#allocation5 + $0x58] sm:$0xff] }
  0x4e   :  { %v246_v52 = vpop.eup %245  ;;  %v115_v54 = vmul.f32 0.6931472, %v244_v47  ;;  %v166_v47 = vsub.f32 %v134_v40, %v150_v41 }
  0x4f   :  { %v248_v55 = vpop.eup %247  ;;  %v117_v56 = vmul.f32 0.6931472, %v246_v52  ;;  %v120_v57 = vadd.f32 %v113_v49, %v84_v44 }
  0x50   :  { %v119_v60 = vmul.f32 0.6931472, %v248_v55  ;;  %v121_v61 = vadd.f32 %v115_v54, %v85_v46  ;;  %v151_v46 = vld [vmem:[#allocation7 + $0x58] sm:$0xff]  ;;  %v137_v55 = vld [vmem:[#allocation5 + $0x68] sm:$0xff]  ;;  %v182_v58 = vmul.f32 %v166_v47, %v166_v47 }
  0x51   :  { %v122_v63 = vadd.f32 %v117_v56, %v86_v48  ;;  %v180_v48 = vmul.f32 %v164_v37, %v164_v37  ;;  %v167_v52 = vsub.f32 %v135_v45, %v151_v46  ;;  %v153_v56 = vld [vmem:[#allocation7 + $0x68] sm:$0xff] }
  0x52   :  { %v123_v2 = vadd.f32 %v119_v60, %v87_v53  ;;  %v189_v4 = vadd.f32 %v121_v61, %v120_v57  ;;  %v181_v53 = vmul.f32 %v165_v42, %v165_v42  ;;  %v168_v57 = vsub.f32 %v136_v50, %v152_v51  ;;  %v138_v60 = vld [vmem:[#allocation5 + $0x70] sm:$0xff] }
  0x53   :  { %v154_v61 = vld [vmem:[#allocation7 + $0x70] sm:$0xff]  ;;  %v169_v62 = vsub.f32 %v137_v55, %v153_v56 }
  0x54   :  { %v190_v9 = vadd.f32 %v189_v4, %v122_v63  ;;  %v183_v63 = vmul.f32 %v167_v52, %v167_v52  ;;  %v170_v3 = vsub.f32 %v138_v60, %v154_v61  ;;  %v184_v4 = vmul.f32 %v168_v57, %v168_v57 }
  0x55   :  { %v185_v7 = vmul.f32 %v169_v62, %v169_v62 }
  0x56   :  { %v191_v14 = vadd.f32 %v190_v9, %v123_v2  ;;  %v155_v2 = vld [vmem:[#allocation7 + $0x78] sm:$0xff]  ;;  %v186_v9 = vmul.f32 %v170_v3, %v170_v3 }
  0x57   :  { %v171_v6 = vsub.f32 %v139_v1, %v155_v2 }
  0x58   :  { %v192_v19 = vadd.f32 %v191_v14, %v172_v8 }
  0x59   :  { %v187_v11 = vmul.f32 %v171_v6, %v171_v6 }
  0x5a   :  { %v193_v24 = vadd.f32 %v192_v19, %v173_v13 }
  0x5c   :  { %v194_v29 = vadd.f32 %v193_v24, %v174_v18 }
  0x5e   :  { %v195_v34 = vadd.f32 %v194_v29, %v175_v23 }
  0x60   :  { %v196_v39 = vadd.f32 %v195_v34, %v176_v28 }
  0x62   :  { %v197_v44 = vadd.f32 %v196_v39, %v177_v33 }
  0x64   :  { %v198_v49 = vadd.f32 %v197_v44, %v178_v38 }
  0x66   :  { %v199_v54 = vadd.f32 %v198_v49, %v179_v43 }
  0x68   :  { %v200_v59 = vadd.f32 %v199_v54, %v180_v48 }
  0x6a   :  { %v201_v0 = vadd.f32 %v200_v59, %v181_v53 }
  0x6c   :  { %v202_v5 = vadd.f32 %v201_v0, %v182_v58 }
  0x6e   :  { %v203_v8 = vadd.f32 %v202_v5, %v183_v63 }
  0x70   :  { %v204_v10 = vadd.f32 %v203_v8, %v184_v4 }
  0x72   :  { %v205_v12 = vadd.f32 %v204_v10, %v185_v7 }
  0x74   :  { %v206_v13 = vadd.f32 %v205_v12, %v186_v9 }
  0x76   :  { %v207_v14 = vadd.f32 %v206_v13, %v187_v11 }
  0x78   :  { %208 = vst [vmem:[#allocation8] sm:$0xff] %v207_v14 }
  0x79   :  { %320 = shalt.err (!%p317_p5)
}
  0x7a   :  { %218 = dma.vmem_to_hbm [thread:$0]  %s216_s2, 128, %s381_s3, [#allocation4]  }
  0x7b   :  { %333 = dma.done.wait [#allocation4], 128  }
  0x7c   :  { %334 = vsyncadd [#allocation4], 4294967168 }
  0x7d   :  { %222 = vsyncpa [#allocation3], 1 }
  0x7e   :  { %223 = vsyncpa [#allocation6], 1 }
  0x7f   :  { %224 = vsyncpa [#allocation4], 1 }

</bundles_post_ra>
